<compile_context>
chip_gen: v7x
topology: tpu7x:2x2x1
jax: 0.10.0
libtpu: 0.0.40
codegen_flags: <defaults>
</compile_context>

<pallas_src>
import numpy as np
import jax
import jax.numpy as jnp
from jax.experimental import pallas as pl
from jax.experimental.pallas import tpu as pltpu


# ---------------------------------------------------------------------------
# Parameter construction (deterministic, mirrors the PyTorch __init__)
# ---------------------------------------------------------------------------
def calc_kernel(t):
    t_arr = np.asarray([[1.0, t, t ** 2, t ** 3]])
    w_arr = np.asarray([[0, 2, 0, 0], [-1, 0, 1, 0], [2, -5, 4, -1], [-1, 3, -3, 1]])
    return 0.5 * np.matmul(t_arr, w_arr)


def build_cubic_weight(scale_factor):
    dt = 1.0 / scale_factor
    kernel = np.zeros((4, scale_factor), dtype=np.float32)
    for i in range(scale_factor - 1):
        kernel[:, i] = calc_kernel((i + 1) * dt).reshape(-1)
    kernel[1, -1] = 1.0
    # Same as torch buffer: flatten row-major, reverse -> conv_transpose weight (kh axis)
    return kernel.flatten()[::-1].copy()          # shape (4 * sf,)


def build_upsample_matrix_folded(H, scale_factor, kflat):
    """Dense (H_out, H) matrix equivalent to: replicate-pad(2,2 along H) ->
    grouped conv_transpose (stride sf, kernel 4*sf along H) -> output crop.
    The replicate padding is folded into the boundary columns of the matrix."""
    sf = scale_factor
    H_pad = H + 4
    H_out = (H - 1) * sf + 2
    Mp = np.zeros((H_out, H_pad), dtype=np.float32)
    for ho in range(H_out):
        g = ho + 4 * sf                            # index in un-cropped output
        r = g % sf
        q = g // sf
        for j in range(4):                         # the 4 taps with kh ≡ r (mod sf)
            ih = q - j
            if 0 <= ih < H_pad:
                Mp[ho, ih] += kflat[r + j * sf]
    # fold replicate pad: padded row p reads original row clamp(p - 2, 0, H - 1)
    M = np.zeros((H_out, H), dtype=np.float32)
    for p in range(H_pad):
        M[:, min(max(p - 2, 0), H - 1)] += Mp[:, p]
    return M


# ---------------------------------------------------------------------------
# Tiling helpers
# ---------------------------------------------------------------------------
def _round_up(a, b):
    return -(-a // b) * b


def _vmem_budget_and_limit():
    """Generation-aware working budget / scoped-VMEM limit."""
    try:
        cap = int(pltpu.get_tpu_info().vmem_capacity_bytes)
    except Exception:
        cap = 64 * 1024 * 1024                     # conservative fallback (v7x per-core)
    limit = (3 * cap) // 4                         # 48 MiB on v7x, 96 MiB on v5e/v6e
    budget = max(limit - 16 * 1024 * 1024, limit // 2)
    return budget, limit


def _choose_c_blk(NC, H, H_out, W, itemsize, budget_bytes):
    """Channels per grid step, sized against the (lane/sublane padded) VMEM
    footprint of the double-buffered input/output blocks."""
    lane = _round_up(max(W, 1), 128)               # last dim is lane-padded to 128
    per_c = (_round_up(H, 8) + _round_up(H_out, 8)) * lane * itemsize
    # M is fetched once (constant index_map) but conservatively budget 2 buffers, f32.
    m_bytes = 2 * _round_up(H_out, 8) * _round_up(H, 128) * 4
    avail = max(budget_bytes - m_bytes, 2 * per_c)
    c_blk = int(avail // (2 * per_c))              # 2x: Pallas double-buffers in/out blocks
    c_blk = max(1, min(c_blk, NC, 64))             # cap the unrolled per-channel loop
    # prefer >= 2 grid steps so the v7x megacore "parallel" axis has work for both cores
    if c_blk >= NC and NC >= 2:
        c_blk = -(-NC // 2)
    return c_blk


# ---------------------------------------------------------------------------
# Pallas kernel + wrapper
# ---------------------------------------------------------------------------
def cubic_upsampling_2d(x, scale_factor):
    """Pallas implementation of CubicUpsampling2d.forward (NCHW)."""
    N, C, H, W = x.shape
    sf = int(scale_factor)
    H_out = (H - 1) * sf + 2

    kflat = build_cubic_weight(sf)
    # Keep the cubic coefficients in float32 even for lower-precision inputs.
    M = jnp.asarray(build_upsample_matrix_folded(H, sf, kflat), dtype=jnp.float32)

    NC = N * C
    x3 = x.reshape(NC, H, W)                       # leading-dim merge: no data movement

    budget, vmem_limit = _vmem_budget_and_limit()
    c_blk = _choose_c_blk(NC, H, H_out, W, x.dtype.itemsize, budget)
    grid = (pl.cdiv(NC, c_blk),)                   # boundary block may be partial

    def _kernel(m_ref, x_ref, o_ref):
        # m_ref: (H_out, H) f32 (grid-invariant, fetched once)
        # x_ref: (c_blk, H, W)   o_ref: (c_blk, H_out, W)
        m = m_ref[...]
        for c in range(c_blk):                     # short static loop, 2-D MXU matmuls
            xc = x_ref[c].astype(jnp.float32)      # (H, W)
            o_ref[c] = jnp.dot(
                m, xc, preferred_element_type=jnp.float32
            ).astype(o_ref.dtype)

    out3 = pl.pallas_call(
        _kernel,
        out_shape=jax.ShapeDtypeStruct((NC, H_out, W), x.dtype),
        grid_spec=pltpu.PrefetchScalarGridSpec(
            num_scalar_prefetch=0,
            grid=grid,
            in_specs=[
                pl.BlockSpec((H_out, H), lambda i: (0, 0)),        # shared f32 weights
                pl.BlockSpec((c_blk, H, W), lambda i: (i, 0, 0)),  # channel block of x
            ],
            out_specs=pl.BlockSpec((c_blk, H_out, W), lambda i: (i, 0, 0)),
        ),
        compiler_params=pltpu.CompilerParams(
            dimension_semantics=("parallel",),
            vmem_limit_bytes=vmem_limit,
        ),
        cost_estimate=pl.CostEstimate(
            flops=int(2 * NC * H_out * H * W),
            bytes_accessed=int(x.dtype.itemsize * NC * W * (H + H_out) + 4 * H * H_out),
            transcendentals=0,
        ),
    )(M, x3)

    return out3.reshape(N, C, H_out, W)            # leading-dim split: no data movement


# ---------------------------------------------------------------------------
# Pure-numpy reference (direct replicate-pad + transposed-conv + crop)
# ---------------------------------------------------------------------------
def _reference_numpy(x, sf):
    kflat = build_cubic_weight(sf)
    N, C, H, W = x.shape
    xp = np.pad(x, ((0, 0), (0, 0), (2, 2), (0, 0)), mode="edge")
    Hp = H + 4
    L = (Hp - 1) * sf + 4 * sf
    out = np.zeros((N, C, L, W), dtype=np.float32)
    for ih in range(Hp):
        for kh in range(4 * sf):
            out[:, :, ih * sf + kh, :] += xp[:, :, ih, :] * kflat[kh]
    start = 4 * (sf - 1) + 4
    end = L - (4 * (sf - 1) + 2)
    return out[:, :, start:end, :]


if __name__ == "__main__":
    scale_factor = 2
    key = jax.random.PRNGKey(0)
    x = jax.random.normal(key, (2, 4, 16, 16), dtype=jnp.float32)

    y = jax.block_until_ready(cubic_upsampling_2d(x, scale_factor))

    # sanity check against the direct transposed-conv reference (exercises the
    # pad-folding in M and the NCHW block plumbing)
    y_ref = _reference_numpy(np.asarray(x), scale_factor)
    assert y.shape == y_ref.shape, (y.shape, y_ref.shape)
    np.testing.assert_allclose(np.asarray(y), y_ref, rtol=1e-5, atol=1e-5)

    print("KERNEL_OK")
</pallas_src>

<mosaic_0001>
module attributes {stable_mosaic.version = 11 : i64} {
  func.func @_kernel(%arg0: i32, %arg1: memref<32x16xf32, #tpu.memory_space<vmem>>, %arg2: memref<4x16x16xf32, #tpu.memory_space<vmem>>, %arg3: memref<4x32x16xf32, #tpu.memory_space<vmem>>) attributes {dimension_semantics = [#tpu.dimension_semantics<parallel>], iteration_bounds = array<i64: 2>, scalar_prefetch = 0 : i64, scratch_operands = 0 : i64, tpu.core_type = #tpu.core_type<tc>, window_params = [{pipeline_mode = #tpu.pipeline_mode<synchronous>, transform_indices = @transform_0, window_bounds = array<i64: 32, 16>}, {transform_indices = @transform_1, window_bounds = array<i64: 4, 16, 16>}, {transform_indices = @transform_2, window_bounds = array<i64: 4, 32, 16>}]} {
    %c0 = arith.constant 0 : index
    %c0_0 = arith.constant 0 : index
    %0 = vector.load %arg1[%c0, %c0_0] : memref<32x16xf32, #tpu.memory_space<vmem>>, vector<32x16xf32>
    %c0_1 = arith.constant 0 : index
    %c0_2 = arith.constant 0 : index
    %c0_3 = arith.constant 0 : index
    %1 = vector.load %arg2[%c0_1, %c0_2, %c0_3] : memref<4x16x16xf32, #tpu.memory_space<vmem>>, vector<1x16x16xf32>
    %2 = vector.shape_cast %1 : vector<1x16x16xf32> to vector<16x16xf32>
    %cst = arith.constant dense<0.000000e+00> : vector<32x16xf32>
    %3 = tpu.matmul %0, %2, %cst {dimension_numbers = #tpu.dot_dimension_numbers<[1], [0], [0], [1], [0, 0, 1, 1], [], []>} : vector<32x16xf32>, vector<16x16xf32>, vector<32x16xf32> -> vector<32x16xf32>
    %c0_4 = arith.constant 0 : index
    %c0_5 = arith.constant 0 : index
    %c0_6 = arith.constant 0 : index
    %4 = vector.load %arg3[%c0_4, %c0_5, %c0_6] : memref<4x32x16xf32, #tpu.memory_space<vmem>>, vector<1x32x16xf32>
    %5 = vector.shape_cast %4 : vector<1x32x16xf32> to vector<32x16xf32>
    %6 = vector.shape_cast %3 : vector<32x16xf32> to vector<1x32x16xf32>
    tpu.vector_store %arg3[%c0_4, %c0_5, %c0_6], %6 {strides = array<i32>} : memref<4x32x16xf32, #tpu.memory_space<vmem>>, vector<1x32x16xf32>,
    %c1 = arith.constant 1 : index
    %c0_7 = arith.constant 0 : index
    %c0_8 = arith.constant 0 : index
    %7 = vector.load %arg2[%c1, %c0_7, %c0_8] : memref<4x16x16xf32, #tpu.memory_space<vmem>>, vector<1x16x16xf32>
    %8 = vector.shape_cast %7 : vector<1x16x16xf32> to vector<16x16xf32>
    %cst_9 = arith.constant dense<0.000000e+00> : vector<32x16xf32>
    %9 = tpu.matmul %0, %8, %cst_9 {dimension_numbers = #tpu.dot_dimension_numbers<[1], [0], [0], [1], [0, 0, 1, 1], [], []>} : vector<32x16xf32>, vector<16x16xf32>, vector<32x16xf32> -> vector<32x16xf32>
    %c1_10 = arith.constant 1 : index
    %c0_11 = arith.constant 0 : index
    %c0_12 = arith.constant 0 : index
    %10 = vector.load %arg3[%c1_10, %c0_11, %c0_12] : memref<4x32x16xf32, #tpu.memory_space<vmem>>, vector<1x32x16xf32>
    %11 = vector.shape_cast %10 : vector<1x32x16xf32> to vector<32x16xf32>
    %12 = vector.shape_cast %9 : vector<32x16xf32> to vector<1x32x16xf32>
    tpu.vector_store %arg3[%c1_10, %c0_11, %c0_12], %12 {strides = array<i32>} : memref<4x32x16xf32, #tpu.memory_space<vmem>>, vector<1x32x16xf32>,
    %c2 = arith.constant 2 : index
    %c0_13 = arith.constant 0 : index
    %c0_14 = arith.constant 0 : index
    %13 = vector.load %arg2[%c2, %c0_13, %c0_14] : memref<4x16x16xf32, #tpu.memory_space<vmem>>, vector<1x16x16xf32>
    %14 = vector.shape_cast %13 : vector<1x16x16xf32> to vector<16x16xf32>
    %cst_15 = arith.constant dense<0.000000e+00> : vector<32x16xf32>
    %15 = tpu.matmul %0, %14, %cst_15 {dimension_numbers = #tpu.dot_dimension_numbers<[1], [0], [0], [1], [0, 0, 1, 1], [], []>} : vector<32x16xf32>, vector<16x16xf32>, vector<32x16xf32> -> vector<32x16xf32>
    %c2_16 = arith.constant 2 : index
    %c0_17 = arith.constant 0 : index
    %c0_18 = arith.constant 0 : index
    %16 = vector.load %arg3[%c2_16, %c0_17, %c0_18] : memref<4x32x16xf32, #tpu.memory_space<vmem>>, vector<1x32x16xf32>
    %17 = vector.shape_cast %16 : vector<1x32x16xf32> to vector<32x16xf32>
    %18 = vector.shape_cast %15 : vector<32x16xf32> to vector<1x32x16xf32>
    tpu.vector_store %arg3[%c2_16, %c0_17, %c0_18], %18 {strides = array<i32>} : memref<4x32x16xf32, #tpu.memory_space<vmem>>, vector<1x32x16xf32>,
    %c3 = arith.constant 3 : index
    %c0_19 = arith.constant 0 : index
    %c0_20 = arith.constant 0 : index
    %19 = vector.load %arg2[%c3, %c0_19, %c0_20] : memref<4x16x16xf32, #tpu.memory_space<vmem>>, vector<1x16x16xf32>
    %20 = vector.shape_cast %19 : vector<1x16x16xf32> to vector<16x16xf32>
    %cst_21 = arith.constant dense<0.000000e+00> : vector<32x16xf32>
    %21 = tpu.matmul %0, %20, %cst_21 {dimension_numbers = #tpu.dot_dimension_numbers<[1], [0], [0], [1], [0, 0, 1, 1], [], []>} : vector<32x16xf32>, vector<16x16xf32>, vector<32x16xf32> -> vector<32x16xf32>
    %c3_22 = arith.constant 3 : index
    %c0_23 = arith.constant 0 : index
    %c0_24 = arith.constant 0 : index
    %22 = vector.load %arg3[%c3_22, %c0_23, %c0_24] : memref<4x32x16xf32, #tpu.memory_space<vmem>>, vector<1x32x16xf32>
    %23 = vector.shape_cast %22 : vector<1x32x16xf32> to vector<32x16xf32>
    %24 = vector.shape_cast %21 : vector<32x16xf32> to vector<1x32x16xf32>
    tpu.vector_store %arg3[%c3_22, %c0_23, %c0_24], %24 {strides = array<i32>} : memref<4x32x16xf32, #tpu.memory_space<vmem>>, vector<1x32x16xf32>,
    return
  }
  func.func @transform_0(%arg0: i32) -> (i32, i32) {
    %c0_i32 = arith.constant 0 : i32
    %c0_i32_0 = arith.constant 0 : i32
    %c0_i32_1 = arith.constant 0 : i32
    return %c0_i32, %c0_i32_0 : i32, i32
  }
  func.func @transform_1(%arg0: i32) -> (i32, i32, i32) {
    %c0_i32 = arith.constant 0 : i32
    %c0_i32_0 = arith.constant 0 : i32
    %c0_i32_1 = arith.constant 0 : i32
    return %arg0, %c0_i32, %c0_i32_0 : i32, i32, i32
  }
  func.func @transform_2(%arg0: i32) -> (i32, i32, i32) {
    %c0_i32 = arith.constant 0 : i32
    %c0_i32_0 = arith.constant 0 : i32
    %c0_i32_1 = arith.constant 0 : i32
    return %arg0, %c0_i32, %c0_i32_0 : i32, i32, i32
  }
}

</mosaic_0001>

<bundles_post_ra>
// kernel: tpu_custom_call.1
= control target key start
LH: loop header
LB: loop body
LE: loop exit
PB: predicated region body
PF: predicated region fallthrough
CT: control target
= control target key end

     0   :  { %7 = vsyncpa [#allocation3], 0  ;;  %s1051_s0 = inlined_call_operand.vmem [shape: f32[32,16], index: 0, kind: input, shape index: {}]   ;;  %s1052_s1 = inlined_call_operand.hbm [shape: f32[8,16,16], index: 1, kind: input, shape index: {}]   ;;  %s1053_s2 = inlined_call_operand.vmem [shape: f32[8,32,16], index: 2, kind: output, shape index: {}]  }
   0x1   :  { %9 = vsyncpa [#allocation3 + $0x1], 0  ;;  %s882_s9 = smov 0   ;;  %s884_s10 = smov 0  }
   0x2   :  { %s886_s11 = smov 0   ;;  %s888_s12 = smov 0  }
   0x3 LB: > { %s625_s13 = sadd.s32 4294967295, %s862_s12   ;;  %s902_s14 = sadd.s32 1, %s862_s12   ;;  %s862_s12 = sphi %s888_s12, %s1060_s12   ;;  %s858_s11 = sphi %s886_s11, %s1059_s11   ;;  %s854_s10 = sphi %s884_s10, %s1058_s10   ;;  %s850_s9 = sphi %s882_s9, %s1057_s9  }
   0x4   : > { %s40_s15 = ssub.s32 %s862_s12, %s902_s14  ;;  %s43_s16 = sadd.s32 1, %s858_s11 }
   0x5   : > { %p41_p0 = scmp.eq.s32.totalorder %s40_s15, 0  ;;  %p50_p1 = scmp.ne.s32.totalorder %s858_s11, %s854_s10 }
   0x6   : > { %p51_p2 = scmp.eq.s32.totalorder %s862_s12, 0  ;;  %p56_p3 = scmp.ne.s32.totalorder %s854_s10, %s850_s9 }
   0x7   : > { %s912_s17 = scalar_select %p41_p0, %s858_s11, %s43_s16  }
   0x8   : > { %p52_p4 = por %p51_p2, %p50_p1  ;;  %p57_p5 = scmp.eq.s32.totalorder %s625_s13, 0 }
   0x9   : > { %p763_p6 = scmp.lt.s32.totalorder %s862_s12, 2  ;;  %s109_s19 = sand.u32 1, %s858_s11  }
   0xa   : > { %p917_p7 = por %p57_p5, %p56_p3  ;;  %s629_s20 = sshll.u32 %s109_s19, 6 }
   0xb   : > { %s675_s21 = sshll.u32 %s862_s12, 10  ;;  %s113_s25 = scalar_lea.vmem [#allocation2], %s629_s20 }
   0xc   : > { %s926_s24 = scalar_lea.hbm %s1052_s1, %s675_s21  ;;  %s121_s26 = sshll.u32 %s113_s25, 4  ;;  %s928_s26 = int_to_ptr.vmem [resolvable:$true] %s121_s26 }
   0xd   : > { %p930_p8 = pnand %p763_p6, %p52_p4  ;;  %s935_s28 = scalar_lea.sflag [#allocation3], %s109_s19 }
   0xe   : > { %s798_s29 = scalar_lea.hbm %s926_s24, 1024  ;;  %s803_s4 = scalar_lea.hbm %s1052_s1, 2048 }
   0xf   : > { %p799_p10 = scmp.ne.s32.totalorder %s926_s24, %s798_s29  ;;  %p800_p11 = pneg %p930_p8 }
  0x10   : > { %p804_p0 = scmp.lt.u32.totalorder %s926_s24, %s1052_s1  ;;  %p805_p1 = scmp.lt.u32.totalorder %s803_s4, %s798_s29 }
  0x11   : > { %p801_p12 = pnand %p800_p11, %p799_p10  ;;  %p807_p3 = scmp.lt.u32.totalorder %s798_s29, %s926_s24 }
  0x12   : > { %p806_p2 = por %p805_p1, %p804_p0 }
  0x13   : > { %p802_p13 = pneg %p801_p12 }
  0x14   : > { %p808_p4 = por %p807_p3, %p806_p2 }
  0x16   : > { %p809_p5 = pnand %p808_p4, %p802_p13 }
  0x18   : > { %812 = shalt.err (!%p809_p5)
}
  0x19   : > { %s813_s7 = scalar_lea.vmem %s928_s26, 1024  ;;  %s864_s8 = smov [#allocation2]  }
  0x1a   : > { %p814_p6 = scmp.ne.s32.totalorder %s928_s26, %s813_s7  ;;  %s818_s9 = sshll.u32 %s864_s8, 4  ;;  %s819_s9 = int_to_ptr.vmem [resolvable:$false] %s818_s9 }
  0x1b   : > { %s820_s15 = scalar_lea.vmem %s819_s9, 2048  ;;  %p821_p9 = scmp.lt.s32.totalorder %s928_s26, %s819_s9 }
  0x1c   : > { %p816_p10 = pnand %p814_p6, %p800_p11  ;;  %p822_p0 = scmp.lt.s32.totalorder %s820_s15, %s813_s7 }
  0x1e   : > { %p817_p12 = pneg %p816_p10  ;;  %p823_p1 = por %p822_p0, %p821_p9 }
  0x20   : > { %p824_p2 = pnand %p823_p1, %p817_p12 }
  0x22   : > { %827 = shalt.err (!%p824_p2)
}
  0x23   : > { %s865_s16 = smov 128   ;;  %s866_s19 = smov 8  }
  0x24   : > { %762 = dma.hbm_to_vmem [thread:$0]  (!%p930_p8), %s926_s24, 1024, %s928_s26, %s935_s28, %s865_s16, %s865_s16, %s866_s19  }
  0x25   : > { %p129_p11 = scmp.lt.s32.totalorder %s862_s12, 3  ;;  %p1056_p13 = scmp.ge.s32.totalorder %s862_s12, 1 }
  0x27   : > { %p130_p3 = pnand %p1056_p13, %p129_p11 }
  0x28   : > { %s135_s20 = sand.u32 (!%p130_p3), 1, %s854_s10  }
  0x29   : > { %133 = sbr.rel (%p130_p3) target bundleno = 283 (0x11b), region = 28  ;;  %s634_s21 = sshll.u32 (!%p130_p3), %s135_s20, 6 }
  0x2a   : > { %s136_s22 = scalar_lea.sflag (!%p130_p3), [#allocation3], %s135_s20  ;;  %s139_s23 = scalar_lea.vmem (!%p130_p3), [#allocation2], %s634_s21 }
  0x30   : > { %845 = dma.done.wait (%p917_p7), %s136_s22, 1024  }
  0x31   : > { %847 = vsyncadd (%p917_p7), %s136_s22, 4294966272  ;;  %vm175_vm0 = vcmask 130048   ;;  %v173_v0 = vld [vmem:[%s139_s23] sm:$0xff]  ;;  %v174_v1 = vld [vmem:[%s139_s23 + $0x8] sm:$0xff]  ;;  %s635_s3 = sshll.u32 %s625_s13, 2 }
  0x32   : > { %v642_v2 = vld [vmem:[%s139_s23 + $0x10] sm:$0xff]  ;;  %v741_v3 = vpack.c.bf16 %v174_v1, %v173_v0  ;;  %v643_v4 = vld [vmem:[%s139_s23 + $0x18] sm:$0xff]  ;;  %v169_v5 = vld [vmem:[%s1051_s0] sm:$0xff]  ;;  %p163_p7 = scmp.lt.s32.totalorder %s635_s3, 7 }
  0x33   : > { %v745_v6 = vpack.c.bf16 %v643_v4, %v642_v2  ;;  %705 = vmatprep.mubr.msk.f32.mxu0 %vm175_vm0, %v169_v5  ;;  %715 = vmatprep.mubr.msk.f32.mxu1 %vm175_vm0, %v169_v5  ;;  %v652_v7 = vld [vmem:[%s139_s23 + $0x20] sm:$0xff]  ;;  %v653_v8 = vld [vmem:[%s139_s23 + $0x28] sm:$0xff]  ;;  %v662_v9 = vld [vmem:[%s139_s23 + $0x30] sm:$0xff] }
  0x34   : > { %742 = vmatprep.subr.bf16.mxu0 %v741_v3  ;;  %v749_v10 = vpack.c.bf16 %v653_v8, %v652_v7  ;;  %v663_v11 = vld [vmem:[%s139_s23 + $0x38] sm:$0xff]  ;;  %v170_v12 = vld [vmem:[%s1051_s0 + $0x8] sm:$0xff]  ;;  %v171_v14 = vld [vmem:[%s1051_s0 + $0x10] sm:$0xff]  ;;  %s1062_s3 = smov (!%p163_p7, %s635_s3), 7 }
  0x35   : > { %744 = vmatpush3.bf16.msra.mxu0 %v741_v3  ;;  %746 = vmatprep.subr.bf16.mxu1 %v745_v6  ;;  %v753_v13 = vpack.c.bf16 %v663_v11, %v662_v9  ;;  %v172_v15 = vld [vmem:[%s1051_s0 + $0x18] sm:$0xff]  ;;  %s676_s4 = sshll.u32 %s1062_s3, 5 }
  0x36   : > { %748 = vmatpush3.bf16.msra.mxu1 %v745_v6  ;;  %750 = vmatprep.subr.bf16.mxu0 %v749_v10  ;;  %s1004_s7 = scalar_lea.vmem %s1053_s2, %s676_s4 }
  0x37   : > { %754 = vmatprep.subr.bf16.mxu1 %v753_v13 }
  0x38   : > { %706 = vmatmul.mubr.msk.f32.vlgmr.msra.gmra.mrb[0].mxu0 %vm175_vm0, %v170_v12 }
  0x39   : > { %716 = vmatmul.mubr.msk.f32.vlgmr.msra.gmra.mrb[0].mxu1 %vm175_vm0, %v170_v12  ;;  %752 = vmatpush3.bf16.msra.mxu0 %v749_v10 }
  0x3a   : > { %756 = vmatpush3.bf16.msra.mxu1 %v753_v13  ;;  %708 = vmatprep.mubr.msk.f32.mxu0 %vm175_vm0, %v171_v14 }
  0x3b   : > { %718 = vmatprep.mubr.msk.f32.mxu1 %vm175_vm0, %v171_v14 }
  0x3c   : > { %709 = vmatmul.mubr.msk.f32.gmra.mrb[2].mxu0 %vm175_vm0, %v172_v15 }
  0x3d   : > { %719 = vmatmul.mubr.msk.f32.gmra.mrb[2].mxu1 %vm175_vm0, %v172_v15  ;;  %725 = vmatprep.mubr.msk.f32.mxu0 %vm175_vm0, %v169_v5 }
  0x3e   : > { %735 = vmatprep.mubr.msk.f32.mxu1 %vm175_vm0, %v169_v5 }
  0x40   : > { %726 = vmatmul.mubr.msk.f32.vlgmr.msra.gmra.mrb[4].mxu0 %vm175_vm0, %v170_v12 }
  0x41   : > { %736 = vmatmul.mubr.msk.f32.vlgmr.msra.gmra.mrb[4].mxu1 %vm175_vm0, %v170_v12  ;;  %728 = vmatprep.mubr.msk.f32.mxu0 %vm175_vm0, %v171_v14 }
  0x42   : > { %738 = vmatprep.mubr.msk.f32.mxu1 %vm175_vm0, %v171_v14 }
  0x44   : > { %729 = vmatmul.mubr.msk.f32.gmra.mrb[6].mxu0 %vm175_vm0, %v172_v15 }
  0x45   : > { %739 = vmatmul.mubr.msk.f32.gmra.mrb[6].mxu1 %vm175_vm0, %v172_v15 }
 0x10b   : > { %v707_v16 = vpop.f32.mrb[0].mxu0 }
 0x10c   : > { %274 = vst.msk [vmem:[%s1004_s7 + $0x8] sm:$0xff] %vm175_vm0, %v707_v16  ;;  %v254_v17 = vpop.f32.mrb[1].mxu0  ;;  %v717_v18 = vpop.f32.mrb[0].mxu1 }
 0x10d   : > { %273 = vst.msk [vmem:[%s1004_s7] sm:$0xff] %vm175_vm0, %v254_v17  ;;  %649 = vst.msk [vmem:[%s1004_s7 + $0x28] sm:$0xff] %vm175_vm0, %v717_v18  ;;  %v346_v19 = vpop.f32.mrb[1].mxu1 }
 0x10e   : > { %648 = vst.msk [vmem:[%s1004_s7 + $0x20] sm:$0xff] %vm175_vm0, %v346_v19 }
 0x10f   : > { %v710_v20 = vpop.f32.mrb[2].mxu0 }
 0x110   : > { %276 = vst.msk [vmem:[%s1004_s7 + $0x18] sm:$0xff] %vm175_vm0, %v710_v20  ;;  %v264_v21 = vpop.f32.mrb[3].mxu0  ;;  %v720_v22 = vpop.f32.mrb[2].mxu1 }
 0x111   : > { %275 = vst.msk [vmem:[%s1004_s7 + $0x10] sm:$0xff] %vm175_vm0, %v264_v21  ;;  %651 = vst.msk [vmem:[%s1004_s7 + $0x38] sm:$0xff] %vm175_vm0, %v720_v22  ;;  %v356_v23 = vpop.f32.mrb[3].mxu1 }
 0x112   : > { %650 = vst.msk [vmem:[%s1004_s7 + $0x30] sm:$0xff] %vm175_vm0, %v356_v23 }
 0x113   : > { %v727_v24 = vpop.f32.mrb[4].mxu0 }
 0x114   : > { %659 = vst.msk [vmem:[%s1004_s7 + $0x48] sm:$0xff] %vm175_vm0, %v727_v24  ;;  %v439_v25 = vpop.f32.mrb[5].mxu0  ;;  %v737_v26 = vpop.f32.mrb[4].mxu1 }
 0x115   : > { %658 = vst.msk [vmem:[%s1004_s7 + $0x40] sm:$0xff] %vm175_vm0, %v439_v25  ;;  %669 = vst.msk [vmem:[%s1004_s7 + $0x68] sm:$0xff] %vm175_vm0, %v737_v26  ;;  %v532_v27 = vpop.f32.mrb[5].mxu1 }
 0x116   : > { %668 = vst.msk [vmem:[%s1004_s7 + $0x60] sm:$0xff] %vm175_vm0, %v532_v27 }
 0x117   : > { %v730_v28 = vpop.f32.mrb[6].mxu0 }
 0x118   : > { %661 = vst.msk [vmem:[%s1004_s7 + $0x58] sm:$0xff] %vm175_vm0, %v730_v28  ;;  %v449_v29 = vpop.f32.mrb[7].mxu0  ;;  %v740_v30 = vpop.f32.mrb[6].mxu1 }
 0x119   : > { %660 = vst.msk [vmem:[%s1004_s7 + $0x50] sm:$0xff] %vm175_vm0, %v449_v29  ;;  %671 = vst.msk [vmem:[%s1004_s7 + $0x78] sm:$0xff] %vm175_vm0, %v740_v30  ;;  %v542_v31 = vpop.f32.mrb[7].mxu1 }
 0x11a   : > { %670 = vst.msk [vmem:[%s1004_s7 + $0x70] sm:$0xff] %vm175_vm0, %v542_v31 }
 0x11b PF: > { %p12_p8 = scmp.ge.s32.totalorder %s902_s14, 4   ;;  %s1057_s9 = smov %s854_s10 }
 0x11c   : > { %s1058_s10 = smov %s858_s11  ;;  %s1059_s11 = smov %s912_s17 }
 0x11d   : > { %s1060_s12 = smov %s902_s14  ;;  %14 = sbr.rel (!%p12_p8) target bundleno = 3 (0x3), region = 74 }
 0x124   :  { %580 = vsyncpa [#allocation3], 1 }
 0x125   :  { %582 = vsyncpa [#allocation3 + $0x1], 1 }

</bundles_post_ra>
